<compile_context>
chip_gen: v6e
topology: v6e:2x2x1
jax: 0.10.0
libtpu: 0.0.40
codegen_flags: <defaults>
</compile_context>

<pallas_src>
import math

import jax
import jax.numpy as jnp
from jax.experimental import pallas as pl
from jax.experimental.pallas import tpu as pltpu

NEG_INF = -30000.0


# ----------------------------------------------------------------------------
# device / tiling helpers
# ----------------------------------------------------------------------------
def _device_kind():
    try:
        return jax.devices()[0].device_kind.lower()
    except Exception:
        return ""


def _vmem_limit_bytes(kind):
    # v5e/v6e: 128 MiB physical -> give the kernel ~100 MiB.
    # v7x:      64 MiB physical -> keep a conservative 48 MiB.
    if "v7" in kind or "7x" in kind:
        return 48 * 1024 * 1024
    if "v5" in kind or "v6" in kind:
        return 100 * 1024 * 1024
    return 64 * 1024 * 1024          # unknown backend / interpret: conservative


def _default_block_q(kind):
    # v6e/v7x MXU tile is 2x256x256 -> tq=256 fills it; v5e (4x128x128) keeps 128.
    return 128 if "v5" in kind else 256


def _largest_divisor_leq(n, cap):
    for c in range(min(n, cap), 0, -1):
        if n % c == 0:
            return c
    return 1


def _pick_tile(total, preferred, align):
    """Largest divisor of `total` <= preferred that is a multiple of `align`.
    Falls back to the full extent (always layout-legal)."""
    if total <= preferred:
        return total
    c = (preferred // align) * align
    while c >= align:
        if total % c == 0:
            return c
        c -= align
    return total


def _shrink_tile(total, current, align):
    """Next smaller legal tile (divisor of total, multiple of align);
    returns `current` if it cannot shrink."""
    c = ((current - 1) // align) * align
    while c >= align:
        if total % c == 0:
            return c
        c -= align
    return current


def _occupancy_guard(BH, Lq, G, tq, min_steps=2):
    """Keep >= min_steps parallel grid steps so both TensorCores (v7x) get work."""
    while (BH // G) * (Lq // tq) < min_steps:
        if G > 1:
            G = _largest_divisor_leq(BH, max(1, G // 2))
        else:
            new_tq = _shrink_tile(Lq, tq, 8)
            if new_tq == tq:
                break
            tq = new_tq
    return G, tq


def _full_path_tiles(BH, Lq, Lk, D, G, tq, in_bytes, out_bytes, attn_bytes,
                     has_mask, budget):
    """Shrink (G, tq) until the full-path per-step VMEM estimate fits."""
    def est(G, tq):
        kv = 2 * (2 * G * Lk * D * in_bytes)            # resident K & V, double-buffered
        qi = 2 * G * tq * D * in_bytes
        mk = (2 * G * tq * Lk) if has_mask else 0       # int8 mask
        ot = 2 * (G * tq * D * out_bytes + G * tq * Lk * attn_bytes)
        tm = 4 * G * tq * Lk * 4                        # s / e / p / select temps (f32)
        return kv + qi + mk + ot + tm

    while est(G, tq) > budget:
        if G > 1:
            G = _largest_divisor_leq(BH, max(1, G // 2))
            continue
        new_tq = _shrink_tile(Lq, tq, 8)
        if new_tq == tq:
            break
        tq = new_tq
    return G, tq


def _flash_tiles(BH, Lq, Lk, D, G, tq, tk, in_bytes, out_bytes, has_mask,
                 need_q_scratch, budget):
    """Shrink (tk, G, tq) until the flash-path per-step VMEM estimate fits."""
    def est(G, tq, tk):
        qi = 2 * G * tq * D * in_bytes
        kv = 2 * (2 * G * tk * D * in_bytes)
        mk = (2 * G * tq * tk) if has_mask else 0
        ot = 2 * G * tq * D * out_bytes
        sc = G * tq * (D + 2) * 4 + (G * tq * D * in_bytes if need_q_scratch else 0)
        tm = 4 * G * tq * tk * 4
        return qi + kv + mk + ot + sc + tm

    while est(G, tq, tk) > budget:
        if tk > 128:
            new_tk = _shrink_tile(Lk, tk, 128)
            if new_tk != tk:
                tk = new_tk
                continue
        if G > 1:
            G = _largest_divisor_leq(BH, max(1, G // 2))
            continue
        new_tq = _shrink_tile(Lq, tq, 8)
        if new_tq == tq:
            break
        tq = new_tq
    return G, tq, tk


def _cost_estimate(BH, Lq, Lk, D, arrays, out_shapes):
    """Advisory cost hint for XLA's scheduler around the custom call."""
    try:
        flops = 4 * BH * Lq * Lk * D                    # QK^T + PV
        transcendentals = BH * Lq * Lk                  # exp
        nbytes = 0
        for x in list(arrays) + list(out_shapes):
            nbytes += math.prod(x.shape) * jnp.dtype(x.dtype).itemsize
        return pl.CostEstimate(flops=int(flops),
                               transcendentals=int(transcendentals),
                               bytes_accessed=int(nbytes))
    except Exception:
        return None


# ----------------------------------------------------------------------------
# kernels
# ----------------------------------------------------------------------------
def _sdpa_full_kernel(scale, has_mask, precision):
    """One (head-group, q-tile) block per step with the full Lk row: exact
    softmax and the full probability matrix (module contract)."""
    def kernel(q_ref, k_ref, v_ref, *rest):
        if has_mask:
            mask_ref, out_ref, attn_ref = rest
        else:
            out_ref, attn_ref = rest

        q = q_ref[...]
        if scale is not None:
            q = q * scale                  # scale the (G,tq,D) tile, not (G,tq,Lk)
        # contract the last axis of both operands -> no k transpose / relayout
        s = jnp.einsum("gqd,gkd->gqk", q, k_ref[...],
                       preferred_element_type=jnp.float32, precision=precision)
        if has_mask:
            s = jnp.where(mask_ref[...] != 0, NEG_INF, s)

        m = jnp.max(s, axis=-1, keepdims=True)
        e = jnp.exp(s - m)
        denom = jnp.sum(e, axis=-1, keepdims=True)
        # exact reciprocal: the probabilities are a module output and feed the
        # PV matmul; the approximate EUP reciprocal is not accurate enough here.
        p = e * pl.reciprocal(denom, approx=False)

        attn_ref[...] = p.astype(attn_ref.dtype)
        o = jnp.einsum("gqk,gkd->gqd", p.astype(v_ref.dtype), v_ref[...],
                       preferred_element_type=jnp.float32, precision=precision)
        out_ref[...] = o.astype(out_ref.dtype)

    return kernel


def _sdpa_flash_kernel(scale, has_mask, precision):
    """Online-softmax (flash) variant: also tiles over Lk; never materializes
    the (Lq, Lk) probability matrix (used when return_attn=False)."""
    def kernel(q_ref, k_ref, v_ref, *rest):
        idx = 0
        if has_mask:
            mask_ref = rest[idx]; idx += 1
        out_ref = rest[idx]; idx += 1
        q_sc = None
        if scale is not None:
            q_sc = rest[idx]; idx += 1
        m_sc, l_sc, acc_sc = rest[idx], rest[idx + 1], rest[idx + 2]

        j = pl.program_id(2)

        @pl.when(j == 0)
        def _():
            if scale is not None:
                # hoisted: scale q once per (b, i) instead of once per k-step
                q_sc[...] = q_ref[...] * scale
            m_sc[...] = jnp.full_like(m_sc, -jnp.inf)
            l_sc[...] = jnp.zeros_like(l_sc)
            acc_sc[...] = jnp.zeros_like(acc_sc)

        q = q_sc[...] if scale is not None else q_ref[...]
        s = jnp.einsum("gqd,gkd->gqk", q, k_ref[...],
                       preferred_element_type=jnp.float32, precision=precision)
        if has_mask:
            s = jnp.where(mask_ref[...] != 0, NEG_INF, s)

        m_prev = m_sc[...]
        m_new = jnp.maximum(m_prev, jnp.max(s, axis=-1, keepdims=True))
        alpha = jnp.exp(m_prev - m_new)
        p = jnp.exp(s - m_new)
        l_sc[...] = alpha * l_sc[...] + jnp.sum(p, axis=-1, keepdims=True)
        acc_sc[...] = alpha * acc_sc[...] + jnp.einsum(
            "gqk,gkd->gqd", p.astype(v_ref.dtype), v_ref[...],
            preferred_element_type=jnp.float32, precision=precision)
        m_sc[...] = m_new

        @pl.when(j == pl.num_programs(2) - 1)
        def _():
            inv = pl.reciprocal(l_sc[...], approx=False)
            out_ref[...] = (acc_sc[...] * inv).astype(out_ref.dtype)

    return kernel


# ----------------------------------------------------------------------------
# wrapper
# ----------------------------------------------------------------------------
def scaled_dot_product_attention(q, k, v, attn_mask=None, *, dropout=0.0,
                                 return_attn=True, mxu_bf16=True,
                                 attn_dtype=None, block_q=None, block_k=None,
                                 block_bh=8):
    """q, k, v: [BH, L, D]; attn_mask: [BH, Lq, Lk] (nonzero/True == masked) or None.

    Returns (output, attn_probs) like the torch module.  With return_attn=False
    a flash (online-softmax) kernel is used and attn_probs is None.
    mxu_bf16=True feeds the MXU bf16 operands with f32 accumulation; set False
    for an exact f32 computation.
    """
    # TODO(synk): training-mode dropout (p > 0.001) not implemented (eval path only).
    assert dropout <= 0.001, "training-mode dropout not implemented"

    BH, Lq, D = q.shape
    _, Lk, _ = k.shape
    orig_dtype = q.dtype
    attn_dtype = attn_dtype if attn_dtype is not None else orig_dtype
    scale = 1.0 / (D ** 0.5)
    has_mask = attn_mask is not None

    kind = _device_kind()
    vmem_limit = _vmem_limit_bytes(kind)
    budget = int(0.8 * vmem_limit)
    if block_q is None:
        block_q = _default_block_q(kind)
    if block_k is None:
        block_k = 1024

    # bf16 MXU feed (f32 accumulation).  Cast in the wrapper so K/V HBM->VMEM
    # traffic is halved; fold the softmax scale into the q cast (free — it
    # fuses with the elementwise cast) so the kernel does no per-step scaling.
    if mxu_bf16 and q.dtype == jnp.float32:
        q_in = (q * scale).astype(jnp.bfloat16)
        k_in = k.astype(jnp.bfloat16)
        v_in = v.astype(jnp.bfloat16)
        kscale = None                       # already applied
    else:
        q_in, k_in, v_in = q, k, v
        kscale = scale                      # applied inside the kernel
    precision = (jax.lax.Precision.HIGHEST
                 if q_in.dtype == jnp.float32 else None)

    in_bytes = jnp.dtype(q_in.dtype).itemsize
    out_bytes = jnp.dtype(orig_dtype).itemsize

    inputs = [q_in, k_in, v_in]
    if has_mask:
        inputs.append(attn_mask.astype(jnp.int8))   # 4x less mask DMA than int32

    G = _largest_divisor_leq(BH, block_bh)          # heads per grid step
    tq = _pick_tile(Lq, block_q, 8)

    if return_attn:
        attn_bytes = jnp.dtype(attn_dtype).itemsize
        G, tq = _full_path_tiles(BH, Lq, Lk, D, G, tq, in_bytes, out_bytes,
                                 attn_bytes, has_mask, budget)
        G, tq = _occupancy_guard(BH, Lq, G, tq)
        grid = (BH // G, Lq // tq)
        in_specs = [
            pl.BlockSpec((G, tq, D), lambda b, i: (b, i, 0)),
            pl.BlockSpec((G, Lk, D), lambda b, i: (b, 0, 0)),   # resident per head-group
            pl.BlockSpec((G, Lk, D), lambda b, i: (b, 0, 0)),
        ]
        if has_mask:
            in_specs.append(pl.BlockSpec((G, tq, Lk), lambda b, i: (b, i, 0)))
        out_specs = [
            pl.BlockSpec((G, tq, D), lambda b, i: (b, i, 0)),
            pl.BlockSpec((G, tq, Lk), lambda b, i: (b, i, 0)),
        ]
        out_shape = (jax.ShapeDtypeStruct((BH, Lq, D), orig_dtype),
                     jax.ShapeDtypeStruct((BH, Lq, Lk), attn_dtype))
        out, attn = pl.pallas_call(
            _sdpa_full_kernel(kscale, has_mask, precision),
            out_shape=out_shape,
            grid_spec=pltpu.PrefetchScalarGridSpec(
                num_scalar_prefetch=0, grid=grid,
                in_specs=in_specs, out_specs=out_specs),
            compiler_params=pltpu.CompilerParams(
                dimension_semantics=("parallel", "parallel"),
                vmem_limit_bytes=vmem_limit),
            cost_estimate=_cost_estimate(BH, Lq, Lk, D, inputs, out_shape),
        )(*inputs)
        return out, attn

    # Flash path (return_attn=False): extra "arbitrary" grid axis over Lk,
    # online softmax in VMEM scratch; never materializes the (Lq, Lk) matrix.
    tk = _pick_tile(Lk, block_k, 128)
    need_q_scratch = kscale is not None
    G, tq, tk = _flash_tiles(BH, Lq, Lk, D, G, tq, tk, in_bytes, out_bytes,
                             has_mask, need_q_scratch, budget)
    G, tq = _occupancy_guard(BH, Lq, G, tq)
    grid = (BH // G, Lq // tq, Lk // tk)
    in_specs = [
        pl.BlockSpec((G, tq, D), lambda b, i, j: (b, i, 0)),
        pl.BlockSpec((G, tk, D), lambda b, i, j: (b, j, 0)),
        pl.BlockSpec((G, tk, D), lambda b, i, j: (b, j, 0)),
    ]
    if has_mask:
        in_specs.append(pl.BlockSpec((G, tq, tk), lambda b, i, j: (b, i, j)))
    scratch_shapes = []
    if need_q_scratch:
        scratch_shapes.append(pltpu.VMEM((G, tq, D), q_in.dtype))
    scratch_shapes += [pltpu.VMEM((G, tq, 1), jnp.float32),
                       pltpu.VMEM((G, tq, 1), jnp.float32),
                       pltpu.VMEM((G, tq, D), jnp.float32)]
    out_shape = jax.ShapeDtypeStruct((BH, Lq, D), orig_dtype)
    out = pl.pallas_call(
        _sdpa_flash_kernel(kscale, has_mask, precision),
        out_shape=out_shape,
        grid_spec=pltpu.PrefetchScalarGridSpec(
            num_scalar_prefetch=0, grid=grid,
            in_specs=in_specs,
            out_specs=pl.BlockSpec((G, tq, D), lambda b, i, j: (b, i, 0)),
            scratch_shapes=scratch_shapes),
        compiler_params=pltpu.CompilerParams(
            dimension_semantics=("parallel", "parallel", "arbitrary"),
            vmem_limit_bytes=vmem_limit),
        cost_estimate=_cost_estimate(BH, Lq, Lk, D, inputs, (out_shape,)),
    )(*inputs)
    return out, None


# ----------------------------------------------------------------------------
# reference (pure JAX, f32 math)
# ----------------------------------------------------------------------------
def _reference(q, k, v, attn_mask, scale):
    qf, kf, vf = (x.astype(jnp.float32) for x in (q, k, v))
    s = jnp.einsum("bqd,bkd->bqk", qf, kf, precision=jax.lax.Precision.HIGHEST)
    if scale is not None:
        s = s * scale
    if attn_mask is not None:
        s = jnp.where(attn_mask, NEG_INF, s)
    p = jax.nn.softmax(s, axis=-1)
    o = jnp.einsum("bqk,bkd->bqd", p, vf, precision=jax.lax.Precision.HIGHEST)
    return o, p


if __name__ == "__main__":
    key = jax.random.PRNGKey(0)

    # toy config implied by the module: seq=8, d_k=32, batch*heads=4
    B, H, Lq, Lk, D = 2, 2, 8, 8, 32
    BH = B * H
    k0, k1, k2, k3 = jax.random.split(key, 4)
    q = jax.random.normal(k0, (BH, Lq, D), dtype=jnp.float32)
    k = jax.random.normal(k1, (BH, Lk, D), dtype=jnp.float32)
    v = jax.random.normal(k2, (BH, Lk, D), dtype=jnp.float32)
    attn_mask = jax.random.bernoulli(k3, p=0.25, shape=(BH, Lq, Lk))
    scale = 1.0 / (D ** 0.5)

    # bf16-quantized copies matching what the default (mxu_bf16=True) wrapper
    # feeds the kernel -> the reference isolates kernel error from quantization.
    q_bf = (q * scale).astype(jnp.bfloat16)
    k_bf = k.astype(jnp.bfloat16)
    v_bf = v.astype(jnp.bfloat16)

    TOL_BF16 = dict(atol=1e-2, rtol=1e-2)
    TOL_F32 = dict(atol=2e-3, rtol=2e-3)

    # 1) full path, masked, default bf16 MXU feed
    out, attn = scaled_dot_product_attention(q, k, v, attn_mask, dropout=0.0)
    jax.block_until_ready((out, attn))
    ref_o, ref_p = _reference(q_bf, k_bf, v_bf, attn_mask, scale=None)
    assert jnp.allclose(out, ref_o, **TOL_BF16), "full/masked/bf16: output mismatch"
    assert jnp.allclose(attn, ref_p, **TOL_BF16), "full/masked/bf16: probs mismatch"

    # 2) full path, masked, exact f32
    out32, attn32 = scaled_dot_product_attention(q, k, v, attn_mask, mxu_bf16=False)
    jax.block_until_ready((out32, attn32))
    ref_o32, ref_p32 = _reference(q, k, v, attn_mask, scale)
    assert jnp.allclose(out32, ref_o32, **TOL_F32), "full/masked/f32: output mismatch"
    assert jnp.allclose(attn32, ref_p32, **TOL_F32), "full/masked/f32: probs mismatch"

    # 3) full path, no mask, default bf16 (specialized kernel, no dummy mask DMA)
    out_nm, attn_nm = scaled_dot_product_attention(q, k, v, None)
    jax.block_until_ready((out_nm, attn_nm))
    ref_o_nm, ref_p_nm = _reference(q_bf, k_bf, v_bf, None, scale=None)
    assert jnp.allclose(out_nm, ref_o_nm, **TOL_BF16), "full/nomask/bf16: output mismatch"
    assert jnp.allclose(attn_nm, ref_p_nm, **TOL_BF16), "full/nomask/bf16: probs mismatch"

    # 4) flash path (online softmax over Lk tiles), masked, default bf16
    Lq2, Lk2 = 64, 256
    f0, f1, f2, f3 = jax.random.split(jax.random.PRNGKey(1), 4)
    q2 = jax.random.normal(f0, (BH, Lq2, D), dtype=jnp.float32)
    k2_ = jax.random.normal(f1, (BH, Lk2, D), dtype=jnp.float32)
    v2 = jax.random.normal(f2, (BH, Lk2, D), dtype=jnp.float32)
    mask2 = jax.random.bernoulli(f3, p=0.25, shape=(BH, Lq2, Lk2))
    out_f, attn_f = scaled_dot_product_attention(
        q2, k2_, v2, mask2, return_attn=False, block_q=32, block_k=128)
    jax.block_until_ready(out_f)
    assert attn_f is None
    ref_f, _ = _reference((q2 * scale).astype(jnp.bfloat16),
                          k2_.astype(jnp.bfloat16), v2.astype(jnp.bfloat16),
                          mask2, scale=None)
    assert jnp.allclose(out_f, ref_f, **TOL_BF16), "flash/masked/bf16: output mismatch"

    # 5) flash path, no mask, exact f32
    out_f32, _ = scaled_dot_product_attention(
        q2, k2_, v2, None, return_attn=False, mxu_bf16=False,
        block_q=32, block_k=128)
    jax.block_until_ready(out_f32)
    ref_f32, _ = _reference(q2, k2_, v2, None, scale)
    assert jnp.allclose(out_f32, ref_f32, **TOL_F32), "flash/nomask/f32: output mismatch"

    print("KERNEL_OK")
</pallas_src>

<mosaic_0001>
module attributes {stable_mosaic.version = 11 : i64} {
  func.func @kernel(%arg0: i32, %arg1: i32, %arg2: memref<2x8x32xbf16, #tpu.memory_space<vmem>>, %arg3: memref<2x8x32xbf16, #tpu.memory_space<vmem>>, %arg4: memref<2x8x32xbf16, #tpu.memory_space<vmem>>, %arg5: memref<2x8x8xi8, #tpu.memory_space<vmem>>, %arg6: memref<2x8x32xf32, #tpu.memory_space<vmem>>, %arg7: memref<2x8x8xf32, #tpu.memory_space<vmem>>) attributes {dimension_semantics = [#tpu.dimension_semantics<parallel>, #tpu.dimension_semantics<parallel>], iteration_bounds = array<i64: 2, 1>, scalar_prefetch = 0 : i64, scratch_operands = 0 : i64, tpu.core_type = #tpu.core_type<tc>, window_params = [{transform_indices = @transform_0, window_bounds = array<i64: 2, 8, 32>}, {transform_indices = @transform_1, window_bounds = array<i64: 2, 8, 32>}, {transform_indices = @transform_2, window_bounds = array<i64: 2, 8, 32>}, {transform_indices = @transform_3, window_bounds = array<i64: 2, 8, 8>}, {transform_indices = @transform_4, window_bounds = array<i64: 2, 8, 32>}, {transform_indices = @transform_5, window_bounds = array<i64: 2, 8, 8>}]} {
    %c0 = arith.constant 0 : index
    %c0_0 = arith.constant 0 : index
    %c0_1 = arith.constant 0 : index
    %0 = vector.load %arg2[%c0, %c0_0, %c0_1] : memref<2x8x32xbf16, #tpu.memory_space<vmem>>, vector<2x8x32xbf16>
    %c0_2 = arith.constant 0 : index
    %c0_3 = arith.constant 0 : index
    %c0_4 = arith.constant 0 : index
    %1 = vector.load %arg3[%c0_2, %c0_3, %c0_4] : memref<2x8x32xbf16, #tpu.memory_space<vmem>>, vector<2x8x32xbf16>
    "tpu.trace_start"() <{level = 10 : i32, message = "gqd,gkd->gqk"}> : () -> ()
    %cst = arith.constant dense<0.000000e+00> : vector<2x8x8xf32>
    %2 = tpu.matmul %0, %1, %cst {dimension_numbers = #tpu.dot_dimension_numbers<[2], [2], [1], [1], [0, 0, 0, 1, 1, 1], [0], [0]>} : vector<2x8x32xbf16>, vector<2x8x32xbf16>, vector<2x8x8xf32> -> vector<2x8x8xf32>
    "tpu.trace_stop"() : () -> ()
    %c0_5 = arith.constant 0 : index
    %c0_6 = arith.constant 0 : index
    %c0_7 = arith.constant 0 : index
    %3 = vector.load %arg5[%c0_5, %c0_6, %c0_7] : memref<2x8x8xi8, #tpu.memory_space<vmem>>, vector<2x8x8xi8>
    %c0_i8 = arith.constant 0 : i8
    %4 = vector.broadcast %c0_i8 : i8 to vector<2x8x8xi8>
    %5 = arith.cmpi ne, %3, %4 : vector<2x8x8xi8>
    %cst_8 = arith.constant -3.000000e+04 : f32
    %6 = vector.broadcast %cst_8 : f32 to vector<2x8x8xf32>
    %7 = arith.select %5, %6, %2 : vector<2x8x8xi1>, vector<2x8x8xf32>
    %cst_9 = arith.constant dense<0xFF800000> : vector<2x8xf32>
    %8 = vector.multi_reduction <maximumf>, %7, %cst_9 [2] : vector<2x8x8xf32> to vector<2x8xf32>
    %9 = vector.shape_cast %8 : vector<2x8xf32> to vector<2x8x1xf32>
    %10 = vector.broadcast %9 : vector<2x8x1xf32> to vector<2x8x8xf32>
    %11 = arith.subf %7, %10 : vector<2x8x8xf32>
    %12 = math.exp %11 : vector<2x8x8xf32>
    %cst_10 = arith.constant dense<0.000000e+00> : vector<2x8xf32>
    %13 = vector.multi_reduction <add>, %12, %cst_10 [2] : vector<2x8x8xf32> to vector<2x8xf32>
    %14 = vector.shape_cast %13 : vector<2x8xf32> to vector<2x8x1xf32>
    %15 = tpu.reciprocal %14 : vector<2x8x1xf32> -> vector<2x8x1xf32>
    %16 = vector.broadcast %15 : vector<2x8x1xf32> to vector<2x8x8xf32>
    %17 = arith.mulf %12, %16 : vector<2x8x8xf32>
    %c0_11 = arith.constant 0 : index
    %c0_12 = arith.constant 0 : index
    %c0_13 = arith.constant 0 : index
    %18 = vector.load %arg7[%c0_11, %c0_12, %c0_13] : memref<2x8x8xf32, #tpu.memory_space<vmem>>, vector<2x8x8xf32>
    tpu.vector_store %arg7[%c0_11, %c0_12, %c0_13], %17 {strides = array<i32>} : memref<2x8x8xf32, #tpu.memory_space<vmem>>, vector<2x8x8xf32>,
    %19 = arith.truncf %17 : vector<2x8x8xf32> to vector<2x8x8xbf16>
    %c0_14 = arith.constant 0 : index
    %c0_15 = arith.constant 0 : index
    %c0_16 = arith.constant 0 : index
    %20 = vector.load %arg4[%c0_14, %c0_15, %c0_16] : memref<2x8x32xbf16, #tpu.memory_space<vmem>>, vector<2x8x32xbf16>
    "tpu.trace_start"() <{level = 10 : i32, message = "gqk,gkd->gqd"}> : () -> ()
    %cst_17 = arith.constant dense<0.000000e+00> : vector<2x8x32xf32>
    %21 = tpu.matmul %19, %20, %cst_17 {dimension_numbers = #tpu.dot_dimension_numbers<[2], [1], [1], [2], [0, 0, 0, 1, 1, 2], [0], [0]>} : vector<2x8x8xbf16>, vector<2x8x32xbf16>, vector<2x8x32xf32> -> vector<2x8x32xf32>
    "tpu.trace_stop"() : () -> ()
    %c0_18 = arith.constant 0 : index
    %c0_19 = arith.constant 0 : index
    %c0_20 = arith.constant 0 : index
    %22 = vector.load %arg6[%c0_18, %c0_19, %c0_20] : memref<2x8x32xf32, #tpu.memory_space<vmem>>, vector<2x8x32xf32>
    tpu.vector_store %arg6[%c0_18, %c0_19, %c0_20], %21 {strides = array<i32>} : memref<2x8x32xf32, #tpu.memory_space<vmem>>, vector<2x8x32xf32>,
    return
  }
  func.func @transform_0(%arg0: i32, %arg1: i32) -> (i32, i32, i32) {
    %c0_i32 = arith.constant 0 : i32
    %c0_i32_0 = arith.constant 0 : i32
    return %arg0, %arg1, %c0_i32 : i32, i32, i32
  }
  func.func @transform_1(%arg0: i32, %arg1: i32) -> (i32, i32, i32) {
    %c0_i32 = arith.constant 0 : i32
    %c0_i32_0 = arith.constant 0 : i32
    %c0_i32_1 = arith.constant 0 : i32
    return %arg0, %c0_i32, %c0_i32_0 : i32, i32, i32
  }
  func.func @transform_2(%arg0: i32, %arg1: i32) -> (i32, i32, i32) {
    %c0_i32 = arith.constant 0 : i32
    %c0_i32_0 = arith.constant 0 : i32
    %c0_i32_1 = arith.constant 0 : i32
    return %arg0, %c0_i32, %c0_i32_0 : i32, i32, i32
  }
  func.func @transform_3(%arg0: i32, %arg1: i32) -> (i32, i32, i32) {
    %c0_i32 = arith.constant 0 : i32
    %c0_i32_0 = arith.constant 0 : i32
    return %arg0, %arg1, %c0_i32 : i32, i32, i32
  }
  func.func @transform_4(%arg0: i32, %arg1: i32) -> (i32, i32, i32) {
    %c0_i32 = arith.constant 0 : i32
    %c0_i32_0 = arith.constant 0 : i32
    return %arg0, %arg1, %c0_i32 : i32, i32, i32
  }
  func.func @transform_5(%arg0: i32, %arg1: i32) -> (i32, i32, i32) {
    %c0_i32 = arith.constant 0 : i32
    %c0_i32_0 = arith.constant 0 : i32
    return %arg0, %arg1, %c0_i32 : i32, i32, i32
  }
}

</mosaic_0001>

<bundles_post_ra>
// kernel: tpu_custom_call.1
= control target key start
LH: loop header
LB: loop body
LE: loop exit
PB: predicated region body
PF: predicated region fallthrough
CT: control target
= control target key end

     0   :  { %s1610_s0 = inlined_call_operand.hbm [shape: bf16[4,8,32], index: 0, kind: input, shape index: {}]   ;;  %s1611_s1 = inlined_call_operand.hbm [shape: bf16[4,8,32], index: 1, kind: input, shape index: {}]   ;;  %s1612_s2 = inlined_call_operand.hbm [shape: bf16[4,8,32], index: 2, kind: input, shape index: {}]   ;;  %s1613_s3 = inlined_call_operand.hbm [shape: s8[4,8,8], index: 3, kind: input, shape index: {}]   ;;  %s1614_s4 = inlined_call_operand.hbm [shape: f32[4,8,32], index: 4, kind: output, shape index: {0}]   ;;  %s1615_s5 = inlined_call_operand.hbm [shape: f32[4,8,8], index: 5, kind: output, shape index: {1}]  }
   0x1   :  { %1623 = sst [smem:[#allocation23_spill]] %s1611_s1 }
   0x2   :  { %1624 = sst [smem:[#allocation24_spill]] %s1614_s4 }
   0x3   :  { %11 = vsyncpa [#allocation3], 0 }
   0x4   :  { %13 = vsyncpa [#allocation3 + $0x1], 0 }
   0x5   :  { %14 = vsyncpa [#allocation6], 0 }
   0x6   :  { %16 = vsyncpa [#allocation6 + $0x1], 0 }
   0x7   :  { %17 = vsyncpa [#allocation9], 0 }
   0x8   :  { %19 = vsyncpa [#allocation9 + $0x1], 0 }
   0x9   :  { %20 = vsyncpa [#allocation4], 0 }
   0xa   :  { %22 = vsyncpa [#allocation4 + $0x1], 0 }
   0xb   :  { %23 = vsyncpa [#allocation12], 0 }
   0xc   :  { %25 = vsyncpa [#allocation12 + $0x1], 0  ;;  %s1308_s18 = smov 0   ;;  %s1310_s19 = smov 0  }
   0xd   :  { %s1312_s20 = smov 0   ;;  %s1314_s21 = smov 0  }
   0xe   :  { %s1316_s22 = smov 0   ;;  %s1318_s23 = smov 0  }
   0xf LB: > { %1625 = sst [smem:[#allocation18_spill]] %s1241_s18  ;;  %s1339_s24 = sadd.s32 4294967295, %s1261_s23   ;;  %s1261_s23 = sphi %s1318_s23, %s31_s23   ;;  %s1257_s22 = sphi %s1316_s22, %s1649_s22   ;;  %s1253_s21 = sphi %s1314_s21, %s1648_s21   ;;  %s1249_s20 = sphi %s1312_s20, %s1644_s20   ;;  %s1245_s19 = sphi %s1310_s19, %s1647_s19   ;;  %s1241_s18 = sphi %s1308_s18, %s1646_s18  }
  0x10   : > { %1626 = sst [smem:[#allocation19_spill]] %s1249_s20  ;;  %s860_s25 = sadd.s32 4294967294, %s1261_s23  }
  0x11   : > { %s43_s26 = sadd.s32 1, %s1257_s22  ;;  %s52_s27 = sadd.s32 1, %s1249_s20 }
  0x12   : > { %p45_p0 = scmp.ge.s32.totalorder %s43_s26, 2  ;;  %p59_p1 = scmp.ne.s32.totalorder %s1249_s20, %s1245_s19 }
  0x13   : > { %p60_p2 = scmp.eq.s32.totalorder %s1261_s23, 0  ;;  %p65_p3 = scmp.ne.s32.totalorder %s1245_s19, %s1241_s18 }
  0x14   : > { %s1651_s26 = smov (%p45_p0, %s43_s26), 0  ;;  %p66_p5 = scmp.eq.s32.totalorder %s1339_s24, 0 }
  0x15   : > { %1627 = sst [smem:[#allocation20_spill]] %s1651_s26  ;;  %p1351_p4 = por %p60_p2, %p59_p1 }
  0x16   : > { %s47_s29 = ssub.s32 %s1257_s22, %s1651_s26  ;;  %p171_p6 = scmp.eq.s32.totalorder %s1339_s24, 1 }
  0x17   : > { %p50_p7 = scmp.eq.s32.totalorder %s47_s29, 0  ;;  %p1359_p8 = por %p66_p5, %p65_p3 }
  0x18   : > { %p1363_p9 = por %p171_p6, %p59_p1  ;;  %p177_p10 = scmp.eq.s32.totalorder %s860_s25, 1 }
  0x19   : > { %s1368_s7 = scalar_select %p50_p7, %s1249_s20, %s52_s27  }
  0x1a   : > { %p1370_p11 = por %p177_p10, %p65_p3  ;;  %p964_p13 = scmp.lt.s32.totalorder %s1261_s23, 2 }
  0x1b   : > { %1631 = sst [smem:[#allocation21_spill]] %s1368_s7  ;;  %s1377_s9 = sand.u32 1, %s1249_s20  }
  0x1c   : > { %s1632_s8 = scalar_select %p1370_p11, 1, 0 }
  0x1d   : > { %s1380_s10 = sshll.u32 %s1377_s9, 3  ;;  %s1383_s11 = sshll.u32 %s1257_s22, 7 }
  0x1e   : > { %1633 = sst [smem:[#allocation22_spill]] %s1632_s8  ;;  %p1387_p0 = pnand %p964_p13, %p1351_p4 }
  0x1f   : > { %s247_s13 = sand.u32 1, %s1261_s23   ;;  %s1635_s1 = sld [smem:[#allocation23_spill]] }
  0x20   : > { %s251_s17 = scalar_lea.vmem [#allocation5], %s1380_s10  ;;  %p875_p1 = scmp.ge.s32.totalorder %s1261_s23, 1 }
  0x21   : > { %s258_s25 = sshll.u32 %s251_s17, 4  ;;  %p309_p2 = scmp.lt.s32.totalorder %s1261_s23, 3  ;;  %s259_s25 = int_to_ptr.vmem [resolvable:$true] %s258_s25 }
  0x22   : > { %s1399_s27 = scalar_lea.sflag [#allocation6], %s247_s13  ;;  %p1033_p3 = pneg %p1387_p0 }
  0x23   : > { %s1044_s28 = scalar_lea.vmem %s259_s25, 128  ;;  %s1263_s29 = smov [#allocation5]  }
  0x24   : > { %p1045_p4 = scmp.ne.s32.totalorder %s259_s25, %s1044_s28  ;;  %s1049_s26 = sshll.u32 %s1263_s29, 4  ;;  %s1050_s26 = int_to_ptr.vmem [resolvable:$false] %s1049_s26 }
  0x25   : > { %s257_s16 = scalar_lea.hbm %s1635_s1, %s1383_s11  ;;  %s1051_s14 = scalar_lea.vmem %s1050_s26, 256 }
  0x26   : > { %p1047_p5 = pnand %p1045_p4, %p1033_p3  ;;  %p1052_p7 = scmp.lt.s32.totalorder %s259_s25, %s1050_s26 }
  0x27   : > { %p1053_p10 = scmp.lt.s32.totalorder %s1051_s14, %s1044_s28 }
  0x28   : > { %p1048_p6 = pneg %p1047_p5 }
  0x29   : > { %p1054_p13 = por %p1053_p10, %p1052_p7 }
  0x2b   : > { %p1055_p12 = pnand %p1054_p13, %p1048_p6 }
  0x2d   : > { %1058 = shalt.err (!%p1055_p12)
}
  0x2e   : > { %s1621_s15 = smov 64   ;;  %s1265_s13 = smov 4  }
  0x2f   : > { %950 = dma.hbm_to_vmem [thread:$0]  (!%p1387_p0), %s257_s16, 128, %s259_s25, %s1399_s27, %s1621_s15, %s1621_s15, %s1265_s13  }
  0x30   : > { %p1416_p4 = pnand %p875_p1, %p309_p2  ;;  %s236_s29 = scalar_lea.hbm %s1610_s0, %s1383_s11 }
  0x31   : > { %s229_s14 = scalar_lea.vmem [#allocation2], %s1380_s10  ;;  %s278_s8 = scalar_lea.hbm %s1612_s2, %s1383_s11 }
  0x32   : > { %s237_s1 = sshll.u32 %s229_s14, 4  ;;  %s226_s18 = scalar_lea.sflag [#allocation3], %s1377_s9  ;;  %s238_s1 = int_to_ptr.vmem [resolvable:$true] %s237_s1 }
  0x33   : > { %s1072_s4 = scalar_lea.vmem %s238_s1, 128  ;;  %s1266_s16 = smov [#allocation2]  }
  0x34   : > { %p1073_p12 = scmp.ne.s32.totalorder %s238_s1, %s1072_s4  ;;  %s1077_s25 = sshll.u32 %s1266_s16, 4  ;;  %s1078_s25 = int_to_ptr.vmem [resolvable:$false] %s1077_s25 }
  0x35   : > { %s1079_s15 = scalar_lea.vmem %s1078_s25, 256  ;;  %p1080_p5 = scmp.lt.s32.totalorder %s238_s1, %s1078_s25 }
  0x36   : > { %p1075_p1 = pnand %p1073_p12, %p1033_p3  ;;  %p1081_p6 = scmp.lt.s32.totalorder %s1079_s15, %s1072_s4 }
  0x38   : > { %p1076_p2 = pneg %p1075_p1  ;;  %p1082_p7 = por %p1081_p6, %p1080_p5 }
  0x3a   : > { %p1083_p10 = pnand %p1082_p7, %p1076_p2 }
  0x3c   : > { %1086 = shalt.err (!%p1083_p10)
}
  0x3d   : > { %s1637_s20 = smov 64   ;;  %s272_s7 = scalar_lea.vmem [#allocation7], %s1380_s10 }
  0x3e   : > { %947 = dma.hbm_to_vmem [thread:$0]  (!%p1387_p0), %s236_s29, 128, %s238_s1, %s226_s18, %s1637_s20, %s1637_s20, %s1265_s13  }
  0x3f   : > { %s279_s17 = sshll.u32 %s272_s7, 4  ;;  %s872_s28 = sshll.u32 %s1377_s9, 2  ;;  %s280_s17 = int_to_ptr.vmem [resolvable:$true] %s279_s17 }
  0x40   : > { %s1100_s14 = scalar_lea.vmem %s280_s17, 128  ;;  %s1267_s4 = smov [#allocation7]  }
  0x41   : > { %p1101_p13 = scmp.ne.s32.totalorder %s280_s17, %s1100_s14  ;;  %s1105_s15 = sshll.u32 %s1267_s4, 4  ;;  %s1106_s15 = int_to_ptr.vmem [resolvable:$false] %s1105_s15 }
  0x42   : > { %s1107_s16 = scalar_lea.vmem %s1106_s15, 256  ;;  %p1108_p2 = scmp.lt.s32.totalorder %s280_s17, %s1106_s15 }
  0x43   : > { %p1103_p12 = pnand %p1101_p13, %p1033_p3  ;;  %p1109_p5 = scmp.lt.s32.totalorder %s1107_s16, %s1100_s14 }
  0x45   : > { %p1104_p1 = pneg %p1103_p12  ;;  %p1110_p6 = por %p1109_p5, %p1108_p2 }
  0x47   : > { %p1111_p7 = pnand %p1110_p6, %p1104_p1 }
  0x49   : > { %1114 = shalt.err (!%p1111_p7)
}
  0x4a   : > { %953 = dma.hbm_to_vmem [thread:$0]  (!%p1387_p0), %s278_s8, 128, %s280_s17, %s1399_s27, %s1637_s20, %s1637_s20, %s1265_s13  }
  0x4b   : > { %s897_s10 = sshll.u32 %s1257_s22, 6  ;;  %s293_s14 = scalar_lea.vmem [#allocation8], %s872_s28 }
  0x4c   : > { %s300_s7 = scalar_lea.hbm %s1613_s3, %s897_s10  ;;  %s301_s4 = sshll.u32 %s293_s14, 4  ;;  %s302_s4 = int_to_ptr.vmem [resolvable:$true] %s301_s4 }
  0x4d   : > { %s290_s15 = scalar_lea.sflag [#allocation9], %s1377_s9  ;;  %s1128_s16 = scalar_lea.vmem %s302_s4, 64 }
  0x4e   : > { %p1129_p10 = scmp.ne.s32.totalorder %s302_s4, %s1128_s16  ;;  %s1268_s11 = smov [#allocation8]  }
  0x4f   : > { %s1133_s1 = sshll.u32 %s1268_s11, 4  ;;  %s1134_s1 = int_to_ptr.vmem [resolvable:$false] %s1133_s1 }
  0x50   : > { %p1131_p13 = pnand %p1129_p10, %p1033_p3  ;;  %s1135_s18 = scalar_lea.vmem %s1134_s1, 128 }
  0x51   : > { %p1136_p1 = scmp.lt.s32.totalorder %s302_s4, %s1134_s1  ;;  %p1137_p2 = scmp.lt.s32.totalorder %s1135_s18, %s1128_s16 }
  0x52   : > { %p1132_p12 = pneg %p1131_p13 }
  0x53   : > { %p1138_p5 = por %p1137_p2, %p1136_p1 }
  0x55   : > { %p1139_p6 = pnand %p1138_p5, %p1132_p12 }
  0x57   : > { %1142 = shalt.err (!%p1139_p6)
}
  0x58   : > { %s1269_s8 = smov 32   ;;  %s1270_s27 = smov 2  }
  0x59   : > { %956 = dma.hbm_to_vmem [thread:$0]  (!%p1387_p0), %s300_s7, 64, %s302_s4, %s290_s15, %s1269_s8, %s1269_s8, %s1270_s27  }
  0x5a   : > { %313 = sbr.rel (%p1416_p4) target bundleno = 833 (0x341), region = 36  ;;  %s1467_s9 = sand.u32 (!%p1416_p4), 1, %s1245_s19  }
  0x5b   : > { %s1470_s13 = sshll.u32 (!%p1416_p4), %s1467_s9, 3  ;;  %s316_s20 = scalar_lea.sflag (!%p1416_p4), [#allocation3], %s1467_s9 }
  0x5c   : > { %s319_s17 = scalar_lea.vmem (!%p1416_p4), [#allocation2], %s1470_s13 }
  0x5f   : > { %1220 = dma.done.wait (%p1359_p8), %s316_s20, 128  }
  0x60   : > { %1222 = vsyncadd (%p1359_p8), %s316_s20, 4294967168  ;;  %s324_s12 = sand.u32 1, %s1339_s24   ;;  %s328_s28 = scalar_lea.vmem [#allocation5], %s1470_s13 }
  0x61   : > { %s325_s26 = scalar_lea.sflag [#allocation6], %s324_s12 }
  0x62   : > { %1224 = dma.done.wait (%p1359_p8), %s325_s26, 256  }
  0x63   : > { %1226 = vsyncadd (%p1359_p8), %s325_s26, 4294967040  ;;  %s879_s10 = sshll.u32 %s1467_s9, 2  ;;  %s337_s29 = scalar_lea.vmem [#allocation7], %s1470_s13 }
  0x64   : > { %s343_s25 = scalar_lea.sflag [#allocation9], %s1467_s9  ;;  %s346_s7 = scalar_lea.vmem [#allocation8], %s879_s10 }
  0x65   : > { %1228 = dma.done.wait (%p1359_p8), %s343_s25, 64  }
  0x66   : > { %1230 = vsyncadd (%p1359_p8), %s343_s25, 4294967232  ;;  %v1271_v0 = vmov 0.0   ;;  %vm1272_vm0 = vmmov 0   ;;  %vm406_vm1 = vcmask 261120   ;;  %v404_v1 = vld [vmem:[%s328_s28] sm:$0xf] }
  0x67   : > { %908 = vmatprep.subr.bf16.mxu0 %v1271_v0  ;;  %914 = vmatprep.subr.bf16.mxu1 %v1271_v0  ;;  %v405_v2 = vld [vmem:[%s328_s28 + $0x4] sm:$0xf]  ;;  %v411_v3 = vsel %vm406_vm1, %v404_v1, 0  ;;  %v402_v5 = vld [vmem:[%s319_s17] sm:$0xf]  ;;  %v1273_v9 = vmov 0  }
  0x68   : > { %910 = vmatprep.mubr.msk.bf16.mxu0 %vm1272_vm0, %v1271_v0  ;;  %916 = vmatprep.mubr.msk.bf16.mxu1 %vm1272_vm0, %v1271_v0  ;;  %v457_v4 = vsel %vm406_vm1, %v405_v2, 0  ;;  %v403_v6 = vld [vmem:[%s319_s17 + $0x4] sm:$0xf]  ;;  %v499_v7 = vld [vmem:[%s346_s7] sm:$0x3]  ;;  %vm511_vm6 = vcmask 64512  }
  0x69   : > { %909 = vmatpush3.bf16.xpose.msra.mxu0 %v411_v3  ;;  %915 = vmatpush3.bf16.xpose.msra.mxu1 %v457_v4  ;;  %v500_v8 = vld [vmem:[%s346_s7 + $0x2] sm:$0x3]  ;;  %vm501_vm2 = vnez %v499_v7  ;;  %v538_v36 = vld [vmem:[%s337_s29] sm:$0xf]  ;;  %vm543_vm7 = vcmask 1043456   ;;  %s880_s24 = sshll.u32 %s1467_s9, 4 }
  0x6a   : > { %920 = vmatprep.subr.bf16.mxu0 %v1271_v0  ;;  %926 = vmatprep.subr.bf16.mxu1 %v1271_v0  ;;  %vm502_vm3 = vnez %v500_v8  ;;  %v503_v10 = vsel %vm501_vm2, 16843009, %v1273_v9  ;;  %v545_v37 = vsel %vm543_vm7, %v538_v36, 0  ;;  %v539_v38 = vld [vmem:[%s337_s29 + $0x4] sm:$0xf]  ;;  %s392_s30 = scalar_lea.vmem [#allocation11], %s880_s24 }
  0x6b   : > { %v504_v11 = vsel %vm502_vm3, 16843009, %v1273_v9  ;;  %v505_v12 = vunpack.c.0.s8 %v503_v10  ;;  %v591_v39 = vsel %vm543_vm7, %v539_v38, 0  ;;  %s672_s14 = sshll.u32 %s392_s30, 4  ;;  %s898_s4 = sshll.u32 %s1253_s21, 8  ;;  %s1515_s14 = int_to_ptr.vmem [resolvable:$true] %s672_s14 }
  0x6c   : > { %v506_v13 = vunpack.c.0.s8 %v504_v11  ;;  %s1522_s11 = scalar_lea.hbm %s1615_s5, %s898_s4  ;;  %s641_s1 = scalar_lea.sflag [#allocation12], %s1467_s9 }
  0x6d   : > { %vm507_vm4 = vcmp.ne.s32.totalorder %v505_v12, 0  ;;  %s1143_s18 = scalar_lea.vmem %s1515_s14, 256  ;;  %s1274_s8 = smov [#allocation11]  }
  0x6e   : > { %vm508_vm5 = vcmp.ne.s32.totalorder %v506_v13, 0  ;;  %p1144_p8 = scmp.ne.s32.totalorder %s1515_s14, %s1143_s18  ;;  %s1147_s27 = sshll.u32 %s1274_s8, 4  ;;  %s1148_s27 = int_to_ptr.vmem [resolvable:$false] %s1147_s27 }
  0x6f   : > { %s1149_s13 = scalar_lea.vmem %s1148_s27, 512  ;;  %p1150_p4 = scmp.lt.s32.totalorder %s1515_s14, %s1148_s27 }
  0x70   : > { %911 = vmatmul.mubr.msk.bf16.vlgmr.msra.gmra.mxu0 %vm406_vm1, %v402_v5  ;;  %917 = vmatmul.mubr.msk.bf16.vlgmr.msra.gmra.mxu1 %vm406_vm1, %v403_v6  ;;  %p1145_p0 = pnand %p1144_p8, %p1363_p9  ;;  %p1151_p7 = scmp.lt.s32.totalorder %s1149_s13, %s1143_s18 }
  0x71   : > { %922 = vmatprep.mubr.msk.bf16.mxu0 %vm1272_vm0, %v1271_v0  ;;  %928 = vmatprep.mubr.msk.bf16.mxu1 %vm1272_vm0, %v1271_v0 }
  0x72   : > { %921 = vmatpush3.bf16.msra.mxu0 %v545_v37  ;;  %927 = vmatpush3.bf16.msra.mxu1 %v591_v39  ;;  %p1146_p3 = pneg %p1145_p0  ;;  %p1152_p10 = por %p1151_p7, %p1150_p4 }
  0x74   : > { %p1153_p13 = pnand %p1152_p10, %p1146_p3 }
 0x130   : > { %v447_v14 = vpop.f32.mrf.mxu0  ;;  %v493_v15 = vpop.f32.mrf.mxu1 }
 0x131   : > { %v509_v16 = vsel %vm507_vm4, -30000.0, %v447_v14  ;;  %v510_v17 = vsel %vm508_vm5, -30000.0, %v493_v15 }
 0x132   : > { %v912_v18 = vpop.f32.mrf.mxu0  ;;  %v918_v19 = vpop.f32.mrf.mxu1  ;;  %v512_v20 = vsel %vm511_vm6, %v509_v16, -inf  ;;  %v515_v23 = vsel %vm511_vm6, %v510_v17, -inf }
 0x133   : > { %513 = vmax.xlane.f32.xlu0 %v512_v20 }
 0x134   : > { %v450_v21 = vpop.f32.mrf.mxu0  ;;  %v496_v22 = vpop.f32.mrf.mxu1 }
 0x136   : > { %v913_v24 = vpop.f32.mrf.mxu0  ;;  %v919_v25 = vpop.f32.mrf.mxu1 }
 0x137   : > { %516 = vmax.xlane.f32.xlu0 %v515_v23 }
 0x1bc   : > { %v514_v26 = vpop.xlane.xlu0 %513 }
 0x1bd   : > { %v518_v27 = vsub.f32 %v509_v16, %v514_v26 }
 0x1bf   : > { %v520_v28 = vmul.f32 1.442695, %v518_v27 }
 0x1c0   : > { %v517_v29 = vpop.xlane.xlu0 %516 }
 0x1c1   : > { %1023 = vpow2.f32 %v520_v28  ;;  %v519_v30 = vsub.f32 %v510_v17, %v517_v29 }
 0x1c3   : > { %v522_v31 = vmul.f32 1.442695, %v519_v30 }
 0x1c5   : > { %1025 = vpow2.f32 %v522_v31 }
 0x1ce   : > { %v1024_v32 = vpop.eup %1023 }
 0x1cf   : > { %v524_v33 = vsel %vm511_vm6, %v1024_v32, 0.0 }
 0x1d0   : > { %525 = vadd.xlane.f32.xlu1 %v524_v33 }
 0x1d2   : > { %v1026_v34 = vpop.eup %1025 }
 0x1d3   : > { %v527_v35 = vsel %vm511_vm6, %v1026_v34, 0.0 }
 0x1d4   : > { %528 = vadd.xlane.f32.xlu1 %v527_v35 }
 0x259   : > { %v526_v40 = vpop.xlane.xlu1 %525 }
 0x25a   : > { %1027 = vrcp.f32 %v526_v40 }
 0x25d   : > { %v529_v41 = vpop.xlane.xlu1 %528 }
 0x25e   : > { %1029 = vrcp.f32 %v529_v41 }
 0x267   : > { %v1028_v42 = vpop.eup %1027 }
 0x268   : > { %v532_v43 = vmul.f32 %v1028_v42, %v1024_v32 }
 0x26a   : > { %v536_v44 = vpack.c.bf16 %v532_v43, %v532_v43  ;;  %534 = vst.msk [vmem:[%s392_s30] sm:$0xff] %vm511_vm6, %v532_v43 }
 0x26b   : > { %v1030_v45 = vpop.eup %1029 }
 0x26c   : > { %v533_v46 = vmul.f32 %v1030_v45, %v1026_v34  ;;  %923 = vmatmul.mubr.msk.bf16.vlgmr.msra.gmra.mxu0 %vm511_vm6, %v536_v44 }
 0x26e   : > { %v537_v47 = vpack.c.bf16 %v533_v46, %v533_v46  ;;  %535 = vst.msk [vmem:[%s392_s30 + $0x8] sm:$0xff] %vm511_vm6, %v533_v46 }
 0x270   : > { %929 = vmatmul.mubr.msk.bf16.vlgmr.msra.gmra.mxu1 %vm511_vm6, %v537_v47 }
 0x271   : > { %1156 = shalt.err (!%p1153_p13)
}
 0x272   : > { %s1157_s20 = scalar_lea.hbm %s1522_s11, 256  ;;  %s1161_s26 = scalar_lea.hbm %s1615_s5, 512 }
 0x273   : > { %p1158_p12 = scmp.ne.s32.totalorder %s1522_s11, %s1157_s20  ;;  %p1162_p5 = scmp.lt.s32.totalorder %s1522_s11, %s1615_s5 }
 0x274   : > { %p1163_p6 = scmp.lt.s32.totalorder %s1161_s26, %s1157_s20 }
 0x275   : > { %p1159_p1 = pnand %p1158_p12, %p1363_p9 }
 0x276   : > { %p1164_p8 = por %p1163_p6, %p1162_p5 }
 0x277   : > { %p1160_p2 = pneg %p1159_p1 }
 0x279   : > { %p1165_p0 = pnand %p1164_p8, %p1160_p2 }
 0x27b   : > { %1168 = shalt.err (!%p1165_p0)
}
 0x27c   : > { %s1275_s29 = smov 128   ;;  %s1276_s25 = smov 8  }
 0x27d   : > { %941 = dma.vmem_to_hbm [thread:$0]  (%p1363_p9), %s1515_s14, 256, %s1522_s11, %s641_s1, %s1275_s29, %s1275_s29, %s1276_s25  }
 0x27e   : > { %s385_s7 = scalar_lea.vmem [#allocation10], %s880_s24  ;;  %s1638_s18 = sld [smem:[#allocation24_spill]] }
 0x27f   : > { %s655_s30 = sshll.u32 %s385_s7, 4  ;;  %s636_s24 = scalar_lea.sflag [#allocation4], %s1467_s9  ;;  %s1553_s30 = int_to_ptr.vmem [resolvable:$true] %s655_s30 }
 0x280   : > { %s1169_s14 = scalar_lea.vmem %s1553_s30, 256  ;;  %s1277_s11 = smov [#allocation10]  }
 0x281   : > { %p1170_p3 = scmp.ne.s32.totalorder %s1553_s30, %s1169_s14  ;;  %s1173_s21 = sshll.u32 %s1277_s11, 4  ;;  %s1174_s21 = int_to_ptr.vmem [resolvable:$false] %s1173_s21 }
 0x282   : > { %s1175_s1 = scalar_lea.vmem %s1174_s21, 512  ;;  %p1176_p10 = scmp.lt.s32.totalorder %s1553_s30, %s1174_s21 }
 0x283   : > { %p1171_p4 = pnand %p1170_p3, %p1363_p9  ;;  %p1177_p13 = scmp.lt.s32.totalorder %s1175_s1, %s1169_s14 }
 0x284   : > { %s1639_s8 = smov %s1638_s18  ;;  %s1560_s27 = scalar_lea.hbm %s1638_s18, %s898_s4 }
 0x285   : > { %p1172_p7 = pneg %p1171_p4  ;;  %p1178_p12 = por %p1177_p13, %p1176_p10 }
 0x287   : > { %p1179_p1 = pnand %p1178_p12, %p1172_p7 }
 0x32c   : > { %v581_v48 = vpop.f32.mrf.mxu0 }
 0x32d   : > { %633 = vst.msk [vmem:[%s385_s7] sm:$0xff] %vm406_vm1, %v581_v48 }
 0x32e   : > { %v924_v49 = vpop.f32.mrf.mxu0 }
 0x330   : > { %v584_v50 = vpop.f32.mrf.mxu0  ;;  %v627_v51 = vpop.f32.mrf.mxu1 }
 0x331   : > { %634 = vst.msk [vmem:[%s385_s7 + $0x8] sm:$0xff] %vm406_vm1, %v627_v51 }
 0x332   : > { %v925_v52 = vpop.f32.mrf.mxu0  ;;  %v930_v53 = vpop.f32.mrf.mxu1 }
 0x333   : > { %1182 = shalt.err (!%p1179_p1)
}
 0x334   : > { %s1183_s4 = scalar_lea.hbm %s1560_s27, 256  ;;  %s1187_s20 = scalar_lea.hbm %s1639_s8, 512 }
 0x335   : > { %p1184_p2 = scmp.ne.s32.totalorder %s1560_s27, %s1183_s4  ;;  %p1188_p8 = scmp.lt.s32.totalorder %s1560_s27, %s1639_s8 }
 0x336   : > { %p1189_p0 = scmp.lt.s32.totalorder %s1187_s20, %s1183_s4 }
 0x337   : > { %p1185_p5 = pnand %p1184_p2, %p1363_p9 }
 0x338   : > { %p1190_p3 = por %p1189_p0, %p1188_p8 }
 0x339   : > { %p1186_p6 = pneg %p1185_p5 }
 0x33b   : > { %p1191_p4 = pnand %p1190_p3, %p1186_p6 }
 0x33d   : > { %1194 = shalt.err (!%p1191_p4)
}
 0x33e   : > { %940 = dma.vmem_to_hbm [thread:$0]  (%p1363_p9), %s1553_s30, 256, %s1560_s27, %s636_s24, %s1275_s29, %s1275_s29, %s1276_s25   ;;  %v630_v54 = vpop.f32.mrf.mxu1 }
 0x340   : > { %v931_v55 = vpop.f32.mrf.mxu1 }
 0x341 PF: > { %s1640_s26 = sld [smem:[#allocation18_spill]]  ;;  %p1642_p7 = scmp.ge.s32.totalorder %s1261_s23, 2 }
 0x343   : > { %p958_p10 = pnand %p1642_p7, %p1370_p11 }
 0x345   : > { %p959_p13 = pneg %p958_p10 }
 0x347   : > { %s687_s10 = sand.u32 1, %s1640_s26  }
 0x348   : > { %s688_s7 = scalar_lea.sflag [#allocation4], %s687_s10 }
 0x349   : > { %1232 = dma.done.wait (%p959_p13), %s688_s7, 256  }
 0x34a   : > { %1234 = vsyncadd (%p959_p13), %s688_s7, 4294967040  ;;  %s697_s6 = scalar_lea.sflag [#allocation12], %s687_s10 }
 0x34b   : > { %1236 = dma.done.wait (%p959_p13), %s697_s6, 256  }
 0x34c   : > { %1238 = vsyncadd (%p959_p13), %s697_s6, 4294967040  ;;  %s31_s23 = sadd.s32 1, %s1261_s23   ;;  %s1643_s29 = sld [smem:[#allocation19_spill]] }
 0x34d   : > { %p28_p9 = scmp.ge.s32.totalorder %s31_s23, 4   ;;  %s1644_s20 = sld [smem:[#allocation21_spill]] }
 0x34e   : > { %s1645_s25 = sld [smem:[#allocation20_spill]]  ;;  %s1646_s18 = smov %s1245_s19 }
 0x34f   : > { %s1648_s21 = smov %s1257_s22 }
 0x350   :  { %30 = sbr.rel (!%p28_p9) target bundleno = 15 (0xf), region = 135 }
 0x352   : > { %s1647_s19 = smov %s1643_s29 }
 0x354   : > { %s1649_s22 = smov %s1645_s25 }
 0x355   :  { %702 = vsyncpa [#allocation3], 1 }
 0x356   :  { %704 = vsyncpa [#allocation3 + $0x1], 1 }
 0x357   :  { %705 = vsyncpa [#allocation6], 1 }
 0x358   :  { %707 = vsyncpa [#allocation6 + $0x1], 1 }
 0x359   :  { %708 = vsyncpa [#allocation9], 1 }
 0x35a   :  { %710 = vsyncpa [#allocation9 + $0x1], 1 }
 0x35b   :  { %711 = vsyncpa [#allocation4], 1 }
 0x35c   :  { %713 = vsyncpa [#allocation4 + $0x1], 1 }
 0x35d   :  { %714 = vsyncpa [#allocation12], 1 }
 0x35e   :  { %716 = vsyncpa [#allocation12 + $0x1], 1 }

</bundles_post_ra>
